<compile_context>
chip_gen: v7x
topology: tpu7x:2x2x1
jax: 0.10.0
libtpu: 0.0.40
codegen_flags: <defaults>
</compile_context>

<pallas_src>
import functools

import jax
import jax.numpy as jnp
from jax.experimental import pallas as pl
from jax.experimental.pallas import tpu as pltpu


OUT_LANES = 128  # lane-dense output slab width


def mlp_kernel(x_ref,
               w1_ref, b1_ref,
               w2_ref, b2_ref,
               w34_ref, b34_ref,
               out_ref, *, npdf):
    x = x_ref[...]                                      # (TB, input_dim)

    # l_1 = sigmoid(input(x))
    l1 = jnp.dot(x, w1_ref[...], preferred_element_type=jnp.float32) + b1_ref[...]
    l1 = jax.nn.sigmoid(l1)                             # (TB, h1)

    # l_2 = sigmoid(hidden(l_1))
    l2 = jnp.dot(l1, w2_ref[...], preferred_element_type=jnp.float32) + b2_ref[...]
    l2 = jax.nn.sigmoid(l2)                             # (TB, h2)

    # Fused output + hyp heads: one MXU pass over the lane-dense packed weight.
    # Columns [0, npdf)      -> w_un (softmax head)
    # Column  npdf           -> hyp pre-activation
    # Columns (npdf, 128)    -> zero padding
    z = jnp.dot(l2, w34_ref[...], preferred_element_type=jnp.float32) + b34_ref[...]

    lane = jax.lax.broadcasted_iota(jnp.int32, z.shape, dimension=1)
    mask_w = lane < npdf
    mask_h = lane == npdf

    # w_pred = softmax over the first npdf lanes only (numerically stable).
    zw = jnp.where(mask_w, z, -jnp.inf)
    m = jnp.max(zw, axis=-1, keepdims=True)
    e = jnp.where(mask_w, jnp.exp(zw - m), 0.0)
    inv = pl.reciprocal(jnp.sum(e, axis=-1, keepdims=True), approx=True)
    w_pred = e * inv

    # hyp = sigmoid on lane npdf, zero elsewhere.
    hyp = jnp.where(mask_h, jax.nn.sigmoid(z), 0.0)

    # Single lane-dense store: [w_pred | hyp | 0-pad].
    out_ref[...] = (w_pred + hyp).astype(out_ref.dtype)


def _round_up(a, m):
    return ((a + m - 1) // m) * m


def mlp_forward(x, params, *, block_b=4096):
    """x: (B, input_dim) float32. params: dict of transposed weights/biases."""
    B, input_dim = x.shape
    w1, b1 = params["w1"], params["b1"]   # (input_dim, h1), (1, h1)
    w2, b2 = params["w2"], params["b2"]   # (h1, h2),        (1, h2)
    w3, b3 = params["w3"], params["b3"]   # (h2, npdf),      (1, npdf)
    wh, bh = params["wh"], params["bh"]   # (h2, 1),         (1, 1)

    h1 = w1.shape[1]
    h2 = w2.shape[1]
    npdf = w3.shape[1]
    assert npdf + 1 <= OUT_LANES

    # Pack the output and hyp heads into a single lane-dense (h2, 128) weight.
    w34 = jnp.zeros((h2, OUT_LANES), jnp.float32)
    w34 = w34.at[:, :npdf].set(w3).at[:, npdf:npdf + 1].set(wh)
    b34 = jnp.zeros((1, OUT_LANES), jnp.float32)
    b34 = b34.at[:, :npdf].set(b3).at[:, npdf:npdf + 1].set(bh)

    # Batch tiling: block_b rows per grid step (sublane multiple of 8), pad B.
    block_b = max(8, min(block_b, _round_up(B, 8)))
    block_b = _round_up(block_b, 8)
    B_pad = _round_up(B, block_b)
    if B_pad != B:
        x = jnp.pad(x, ((0, B_pad - B), (0, 0)))
    grid = (B_pad // block_b,)

    # Explicit VMEM budget (double-buffered x & output tiles + temporaries +
    # weights), capped well under v7x's 64 MiB physical VMEM.
    bytes_f32 = 4
    weight_bytes = sum(int(a.size) * bytes_f32 for a in (w1, b1, w2, b2, w34, b34))
    work_bytes = (2 * block_b * input_dim          # x double-buffer
                  + 2 * block_b * OUT_LANES        # output double-buffer
                  + block_b * (h1 + h2 + OUT_LANES)  # l1 / l2 / z temporaries
                  ) * bytes_f32 + 2 * weight_bytes
    vmem_limit = int(min(max(2 * work_bytes, 16 * 1024 * 1024), 48 * 1024 * 1024))

    # Weights/biases are small: give every grid step the full tensor.
    def full(shape):
        return pl.BlockSpec(shape, lambda i, _n=len(shape): (0,) * _n)

    out = pl.pallas_call(
        functools.partial(mlp_kernel, npdf=npdf),
        out_shape=jax.ShapeDtypeStruct((B_pad, OUT_LANES), jnp.float32),
        grid_spec=pltpu.PrefetchScalarGridSpec(
            num_scalar_prefetch=0,
            grid=grid,
            in_specs=[
                pl.BlockSpec((block_b, input_dim), lambda i: (i, 0)),
                full(w1.shape), full(b1.shape),
                full(w2.shape), full(b2.shape),
                full(w34.shape), full(b34.shape),
            ],
            out_specs=pl.BlockSpec((block_b, OUT_LANES), lambda i: (i, 0)),
        ),
        compiler_params=pltpu.CompilerParams(
            dimension_semantics=("parallel",),
            vmem_limit_bytes=vmem_limit),
    )(x, w1, b1, w2, b2, w34, b34)

    # Unpack the lane-dense slab; drop padded batch rows.
    w_pred = out[:B, :npdf]
    hyp = out[:B, npdf:npdf + 1]
    return w_pred, hyp


def init_params(key, input_dim, npdf, h1_dim, h2_dim):
    """Deterministic init mimicking nn.Linear's uniform(-1/sqrt(fan_in), +)."""
    ks = jax.random.split(key, 8)

    def lin(kw, kb, fan_in, fan_out):
        bound = 1.0 / jnp.sqrt(fan_in)
        w = jax.random.uniform(kw, (fan_in, fan_out), jnp.float32, -bound, bound)
        b = jax.random.uniform(kb, (1, fan_out), jnp.float32, -bound, bound)
        return w, b

    w1, b1 = lin(ks[0], ks[1], input_dim, h1_dim)
    w2, b2 = lin(ks[2], ks[3], h1_dim, h2_dim)
    w3, b3 = lin(ks[4], ks[5], h2_dim, npdf)
    # self.hyp = nn.Linear(h1_dim, 1); applied to l_2 => requires h1_dim == h2_dim
    wh, bh = lin(ks[6], ks[7], h1_dim, 1)
    return dict(w1=w1, b1=b1, w2=w2, b2=b2, w3=w3, b3=b3, wh=wh, bh=bh)


def mlp_reference(x, p):
    l1 = jax.nn.sigmoid(x @ p["w1"] + p["b1"])
    l2 = jax.nn.sigmoid(l1 @ p["w2"] + p["b2"])
    w_un = l2 @ p["w3"] + p["b3"]
    hyp = jax.nn.sigmoid(l2 @ p["wh"] + p["bh"])
    w_pred = jax.nn.softmax(w_un, axis=1)
    return w_pred, hyp


if __name__ == "__main__":
    # Small shapes consistent with the module's forward.
    # B deliberately NOT a multiple of the batch tile, to exercise padding and
    # a multi-step (pipelined) grid.
    B, input_dim, npdf, h1_dim, h2_dim = 20, 4, 10, 32, 32

    key = jax.random.PRNGKey(0)
    kx, kp = jax.random.split(key)
    x = jax.random.normal(kx, (B, input_dim), dtype=jnp.float32)
    params = init_params(kp, input_dim, npdf, h1_dim, h2_dim)

    # block_b=8 -> B_pad=24, grid=(3,): multiple pipelined/parallel grid steps.
    w_pred, hyp = mlp_forward(x, params, block_b=8)
    jax.block_until_ready((w_pred, hyp))

    # sanity check against pure-JAX reference (approx reciprocal in softmax
    # denominator -> slightly relaxed tolerance for w_pred).
    w_ref, h_ref = mlp_reference(x, params)
    assert w_pred.shape == (B, npdf) and hyp.shape == (B, 1)
    assert jnp.allclose(w_pred, w_ref, atol=2e-3, rtol=2e-3)
    assert jnp.allclose(hyp, h_ref, atol=1e-5, rtol=1e-5)

    print("KERNEL_OK")
</pallas_src>

<mosaic_0001>
module attributes {stable_mosaic.version = 11 : i64} {
  func.func @mlp_kernel(%arg0: i32, %arg1: memref<8x4xf32, #tpu.memory_space<vmem>>, %arg2: memref<4x32xf32, #tpu.memory_space<vmem>>, %arg3: memref<1x32xf32, #tpu.memory_space<vmem>>, %arg4: memref<32x32xf32, #tpu.memory_space<vmem>>, %arg5: memref<1x32xf32, #tpu.memory_space<vmem>>, %arg6: memref<32x128xf32, #tpu.memory_space<vmem>>, %arg7: memref<1x128xf32, #tpu.memory_space<vmem>>, %arg8: memref<8x128xf32, #tpu.memory_space<vmem>>) attributes {dimension_semantics = [#tpu.dimension_semantics<parallel>], iteration_bounds = array<i64: 3>, scalar_prefetch = 0 : i64, scratch_operands = 0 : i64, tpu.core_type = #tpu.core_type<tc>, window_params = [{transform_indices = @transform_0, window_bounds = array<i64: 8, 4>}, {pipeline_mode = #tpu.pipeline_mode<synchronous>, transform_indices = @transform_1, window_bounds = array<i64: 4, 32>}, {pipeline_mode = #tpu.pipeline_mode<synchronous>, transform_indices = @transform_2, window_bounds = array<i64: 1, 32>}, {pipeline_mode = #tpu.pipeline_mode<synchronous>, transform_indices = @transform_3, window_bounds = array<i64: 32, 32>}, {pipeline_mode = #tpu.pipeline_mode<synchronous>, transform_indices = @transform_4, window_bounds = array<i64: 1, 32>}, {pipeline_mode = #tpu.pipeline_mode<synchronous>, transform_indices = @transform_5, window_bounds = array<i64: 32, 128>}, {pipeline_mode = #tpu.pipeline_mode<synchronous>, transform_indices = @transform_6, window_bounds = array<i64: 1, 128>}, {transform_indices = @transform_7, window_bounds = array<i64: 8, 128>}]} {
    %c0 = arith.constant 0 : index
    %c0_0 = arith.constant 0 : index
    %0 = vector.load %arg1[%c0, %c0_0] : memref<8x4xf32, #tpu.memory_space<vmem>>, vector<8x4xf32>
    %c0_1 = arith.constant 0 : index
    %c0_2 = arith.constant 0 : index
    %1 = vector.load %arg2[%c0_1, %c0_2] : memref<4x32xf32, #tpu.memory_space<vmem>>, vector<4x32xf32>
    %cst = arith.constant dense<0.000000e+00> : vector<8x32xf32>
    %2 = tpu.matmul %0, %1, %cst {dimension_numbers = #tpu.dot_dimension_numbers<[1], [0], [0], [1], [0, 0, 1, 1], [], []>} : vector<8x4xf32>, vector<4x32xf32>, vector<8x32xf32> -> vector<8x32xf32>
    %c0_3 = arith.constant 0 : index
    %c0_4 = arith.constant 0 : index
    %3 = vector.load %arg3[%c0_3, %c0_4] : memref<1x32xf32, #tpu.memory_space<vmem>>, vector<1x32xf32>
    %4 = vector.broadcast %3 : vector<1x32xf32> to vector<8x32xf32>
    %5 = arith.addf %2, %4 : vector<8x32xf32>
    %6 = arith.negf %5 : vector<8x32xf32>
    %7 = math.exp %6 : vector<8x32xf32>
    %cst_5 = arith.constant 1.000000e+00 : f32
    %8 = vector.broadcast %cst_5 : f32 to vector<8x32xf32>
    %9 = arith.addf %8, %7 : vector<8x32xf32>
    %10 = arith.divf %8, %9 : vector<8x32xf32>
    %c0_6 = arith.constant 0 : index
    %c0_7 = arith.constant 0 : index
    %11 = vector.load %arg4[%c0_6, %c0_7] : memref<32x32xf32, #tpu.memory_space<vmem>>, vector<32x32xf32>
    %cst_8 = arith.constant dense<0.000000e+00> : vector<8x32xf32>
    %12 = tpu.matmul %10, %11, %cst_8 {dimension_numbers = #tpu.dot_dimension_numbers<[1], [0], [0], [1], [0, 0, 1, 1], [], []>} : vector<8x32xf32>, vector<32x32xf32>, vector<8x32xf32> -> vector<8x32xf32>
    %c0_9 = arith.constant 0 : index
    %c0_10 = arith.constant 0 : index
    %13 = vector.load %arg5[%c0_9, %c0_10] : memref<1x32xf32, #tpu.memory_space<vmem>>, vector<1x32xf32>
    %14 = vector.broadcast %13 : vector<1x32xf32> to vector<8x32xf32>
    %15 = arith.addf %12, %14 : vector<8x32xf32>
    %16 = arith.negf %15 : vector<8x32xf32>
    %17 = math.exp %16 : vector<8x32xf32>
    %cst_11 = arith.constant 1.000000e+00 : f32
    %18 = vector.broadcast %cst_11 : f32 to vector<8x32xf32>
    %19 = arith.addf %18, %17 : vector<8x32xf32>
    %20 = arith.divf %18, %19 : vector<8x32xf32>
    %c0_12 = arith.constant 0 : index
    %c0_13 = arith.constant 0 : index
    %21 = vector.load %arg6[%c0_12, %c0_13] : memref<32x128xf32, #tpu.memory_space<vmem>>, vector<32x128xf32>
    %cst_14 = arith.constant dense<0.000000e+00> : vector<8x128xf32>
    %22 = tpu.matmul %20, %21, %cst_14 {dimension_numbers = #tpu.dot_dimension_numbers<[1], [0], [0], [1], [0, 0, 1, 1], [], []>} : vector<8x32xf32>, vector<32x128xf32>, vector<8x128xf32> -> vector<8x128xf32>
    %c0_15 = arith.constant 0 : index
    %c0_16 = arith.constant 0 : index
    %23 = vector.load %arg7[%c0_15, %c0_16] : memref<1x128xf32, #tpu.memory_space<vmem>>, vector<1x128xf32>
    %24 = vector.broadcast %23 : vector<1x128xf32> to vector<8x128xf32>
    %25 = arith.addf %22, %24 : vector<8x128xf32>
    %26 = tpu.iota {dimensions = array<i32: 1>} : vector<8x128xi32>
    %c10_i32 = arith.constant 10 : i32
    %27 = vector.broadcast %c10_i32 : i32 to vector<8x128xi32>
    %28 = arith.cmpi slt, %26, %27 : vector<8x128xi32>
    %c10_i32_17 = arith.constant 10 : i32
    %29 = vector.broadcast %c10_i32_17 : i32 to vector<8x128xi32>
    %30 = arith.cmpi eq, %26, %29 : vector<8x128xi32>
    %cst_18 = arith.constant 0xFF800000 : f32
    %31 = vector.broadcast %cst_18 : f32 to vector<8x128xf32>
    %32 = arith.select %28, %25, %31 : vector<8x128xi1>, vector<8x128xf32>
    %cst_19 = arith.constant dense<0xFF800000> : vector<8xf32>
    %33 = vector.multi_reduction <maximumf>, %32, %cst_19 [1] : vector<8x128xf32> to vector<8xf32>
    %34 = vector.shape_cast %33 : vector<8xf32> to vector<8x1xf32>
    %35 = vector.broadcast %34 : vector<8x1xf32> to vector<8x128xf32>
    %36 = arith.subf %32, %35 : vector<8x128xf32>
    %37 = math.exp %36 : vector<8x128xf32>
    %cst_20 = arith.constant 0.000000e+00 : f32
    %38 = vector.broadcast %cst_20 : f32 to vector<8x128xf32>
    %39 = arith.select %28, %37, %38 : vector<8x128xi1>, vector<8x128xf32>
    %cst_21 = arith.constant dense<0.000000e+00> : vector<8xf32>
    %40 = vector.multi_reduction <add>, %39, %cst_21 [1] : vector<8x128xf32> to vector<8xf32>
    %41 = vector.shape_cast %40 : vector<8xf32> to vector<8x1xf32>
    %42 = tpu.reciprocal %41 {approx = true} : vector<8x1xf32> -> vector<8x1xf32>
    %43 = vector.broadcast %42 : vector<8x1xf32> to vector<8x128xf32>
    %44 = arith.mulf %39, %43 : vector<8x128xf32>
    %45 = arith.negf %25 : vector<8x128xf32>
    %46 = math.exp %45 : vector<8x128xf32>
    %cst_22 = arith.constant 1.000000e+00 : f32
    %47 = vector.broadcast %cst_22 : f32 to vector<8x128xf32>
    %48 = arith.addf %47, %46 : vector<8x128xf32>
    %49 = arith.divf %47, %48 : vector<8x128xf32>
    %cst_23 = arith.constant 0.000000e+00 : f32
    %50 = vector.broadcast %cst_23 : f32 to vector<8x128xf32>
    %51 = arith.select %30, %49, %50 : vector<8x128xi1>, vector<8x128xf32>
    %52 = arith.addf %44, %51 : vector<8x128xf32>
    %c0_24 = arith.constant 0 : index
    %c0_25 = arith.constant 0 : index
    %53 = vector.load %arg8[%c0_24, %c0_25] : memref<8x128xf32, #tpu.memory_space<vmem>>, vector<8x128xf32>
    tpu.vector_store %arg8[%c0_24, %c0_25], %52 {strides = array<i32>} : memref<8x128xf32, #tpu.memory_space<vmem>>, vector<8x128xf32>,
    return
  }
  func.func @transform_0(%arg0: i32) -> (i32, i32) {
    %c0_i32 = arith.constant 0 : i32
    %c0_i32_0 = arith.constant 0 : i32
    return %arg0, %c0_i32 : i32, i32
  }
  func.func @transform_1(%arg0: i32) -> (i32, i32) {
    %c0_i32 = arith.constant 0 : i32
    %c0_i32_0 = arith.constant 0 : i32
    %c0_i32_1 = arith.constant 0 : i32
    return %c0_i32, %c0_i32_0 : i32, i32
  }
  func.func @transform_2(%arg0: i32) -> (i32, i32) {
    %c0_i32 = arith.constant 0 : i32
    %c0_i32_0 = arith.constant 0 : i32
    %c0_i32_1 = arith.constant 0 : i32
    return %c0_i32, %c0_i32_0 : i32, i32
  }
  func.func @transform_3(%arg0: i32) -> (i32, i32) {
    %c0_i32 = arith.constant 0 : i32
    %c0_i32_0 = arith.constant 0 : i32
    %c0_i32_1 = arith.constant 0 : i32
    return %c0_i32, %c0_i32_0 : i32, i32
  }
  func.func @transform_4(%arg0: i32) -> (i32, i32) {
    %c0_i32 = arith.constant 0 : i32
    %c0_i32_0 = arith.constant 0 : i32
    %c0_i32_1 = arith.constant 0 : i32
    return %c0_i32, %c0_i32_0 : i32, i32
  }
  func.func @transform_5(%arg0: i32) -> (i32, i32) {
    %c0_i32 = arith.constant 0 : i32
    %c0_i32_0 = arith.constant 0 : i32
    %c0_i32_1 = arith.constant 0 : i32
    return %c0_i32, %c0_i32_0 : i32, i32
  }
  func.func @transform_6(%arg0: i32) -> (i32, i32) {
    %c0_i32 = arith.constant 0 : i32
    %c0_i32_0 = arith.constant 0 : i32
    %c0_i32_1 = arith.constant 0 : i32
    return %c0_i32, %c0_i32_0 : i32, i32
  }
  func.func @transform_7(%arg0: i32) -> (i32, i32) {
    %c0_i32 = arith.constant 0 : i32
    %c0_i32_0 = arith.constant 0 : i32
    return %arg0, %c0_i32 : i32, i32
  }
}

</mosaic_0001>

<bundles_post_ra>
// kernel: tpu_custom_call.1
= control target key start
LH: loop header
LB: loop body
LE: loop exit
PB: predicated region body
PF: predicated region fallthrough
CT: control target
= control target key end

     0   :  { %12 = vsyncpa [#allocation3], 0  ;;  %s1116_s0 = inlined_call_operand.vmem [shape: f32[24,4], index: 0, kind: input, shape index: {}]   ;;  %s1117_s1 = inlined_call_operand.vmem [shape: f32[4,32], index: 1, kind: input, shape index: {}]   ;;  %s1118_s2 = inlined_call_operand.vmem [shape: f32[1,32], index: 2, kind: input, shape index: {}]   ;;  %s1119_s3 = inlined_call_operand.vmem [shape: f32[32,32], index: 3, kind: input, shape index: {}]   ;;  %s1120_s4 = inlined_call_operand.vmem [shape: f32[1,32], index: 4, kind: input, shape index: {}]   ;;  %s1121_s5 = inlined_call_operand.hbm [shape: f32[32,128], index: 5, kind: input, shape index: {}]   ;;  %s1122_s6 = inlined_call_operand.vmem [shape: f32[1,128], index: 6, kind: input, shape index: {}]   ;;  %s1123_s7 = inlined_call_operand.hbm [shape: f32[24,128], index: 7, kind: output, shape index: {}]  }
   0x1   :  { %13 = vsyncpa [#allocation4], 0 }
   0x2   :  { %15 = vsyncpa [#allocation4 + $0x1], 0  ;;  %s953_s24 = smov 0   ;;  %s955_s25 = smov 0  }
   0x3   :  { %s957_s26 = smov 0   ;;  %s959_s27 = smov 0  }
   0x4 LB: > { %s974_s28 = sadd.s32 4294967295, %s904_s27   ;;  %s666_s29 = sadd.s32 4294967294, %s904_s27   ;;  %s904_s27 = sphi %s959_s27, %s1139_s27   ;;  %s900_s26 = sphi %s957_s26, %s1138_s26   ;;  %s896_s25 = sphi %s955_s25, %s1137_s25   ;;  %s892_s24 = sphi %s953_s24, %s1136_s24  }
   0x5   : > { %s978_s30 = sadd.s32 1, %s904_s27   ;;  %s180_s8 = sadd.s32 1, %s900_s26 }
   0x6   : > { %s177_s9 = ssub.s32 %s904_s27, %s978_s30  ;;  %p190_p0 = scmp.ne.s32.totalorder %s900_s26, %s896_s25 }
   0x7   : > { %p178_p1 = scmp.eq.s32.totalorder %s177_s9, 0  ;;  %p191_p2 = scmp.eq.s32.totalorder %s974_s28, 2 }
   0x8   : > { %p196_p3 = scmp.ne.s32.totalorder %s896_s25, %s892_s24  ;;  %p197_p4 = scmp.eq.s32.totalorder %s666_s29, 2 }
   0x9   : > { %s989_s10 = scalar_select %p178_p1, %s900_s26, %s180_s8  }
   0xa   : > { %p991_p5 = por %p191_p2, %p190_p0  ;;  %p995_p6 = por %p197_p4, %p196_p3 }
   0xb   : > { %p667_p7 = scmp.ge.s32.totalorder %s904_s27, 1  ;;  %p204_p8 = scmp.lt.s32.totalorder %s904_s27, 4 }
   0xc   : > { %s1127_s11 = scalar_select %p991_p5, 1, 0 }
   0xd   : > { %s1128_s12 = scalar_select %p995_p6, 1, 0 }
   0xe   : > { %p1124_p9 = scmp.eq.s32.totalorder %s974_s28, 0  ;;  %p1002_p10 = pnand %p667_p7, %p204_p8 }
   0xf   : > { %s906_s14 = smov [#allocation2]   ;;  %s810_s19 = scalar_lea.hbm %s1121_s5, 512 }
  0x10   : > { %s1129_s13 = scalar_select %p1002_p10, 1, 0 }
  0x11   : > { %s228_s15 = sshll.u32 %s906_s14, 4  ;;  %p745_p11 = pneg %p1002_p10  ;;  %s229_s15 = int_to_ptr.vmem [resolvable:$true] %s228_s15 }
  0x12   : > { %p811_p13 = scmp.ne.s32.totalorder %s1121_s5, %s810_s19  ;;  %p817_p3 = scmp.lt.u32.totalorder %s810_s19, %s1121_s5 }
  0x13   : > { %p1010_p12 = pnand %p1124_p9, %p745_p11 }
  0x15   : > { %p812_p0 = pneg %p1010_p12 }
  0x17   : > { %p813_p1 = pnand %p812_p0, %p811_p13 }
  0x19   : > { %p814_p2 = pneg %p813_p1 }
  0x1b   : > { %p819_p4 = pnand %p817_p3, %p814_p2 }
  0x1d   : > { %822 = shalt.err (!%p819_p4)
}
  0x1e   : > { %s823_s29 = scalar_lea.vmem %s229_s15, 512  ;;  %p831_p9 = scmp.lt.s32.totalorder %s229_s15, %s229_s15 }
  0x1f   : > { %p824_p7 = scmp.ne.s32.totalorder %s229_s15, %s823_s29  ;;  %p832_p6 = scmp.lt.s32.totalorder %s823_s29, %s823_s29 }
  0x21   : > { %p826_p8 = pnand %p824_p7, %p812_p0  ;;  %p833_p5 = por %p832_p6, %p831_p9 }
  0x23   : > { %p827_p11 = pneg %p826_p8 }
  0x25   : > { %p834_p10 = pnand %p833_p5, %p827_p11 }
  0x27   : > { %837 = shalt.err (!%p834_p10)
}
  0x28   : > { %s907_s8 = smov 128   ;;  %s908_s9 = smov 8  }
  0x29   : > { %748 = dma.hbm_to_vmem [thread:$0]  (!%p1010_p12), %s1121_s5, 512, %s229_s15, [#allocation3], %s907_s8, %s907_s8, %s908_s9  }
  0x2a   : > { %p1131_p13 = scmp.ne.s32.totalorder %s1129_s13, 0 }
  0x2b   : > { %p1132_p1 = scmp.eq.s32.totalorder (!%p1131_p13), %s974_s28, 0 }
  0x2c   : > { %254 = sbr.rel (%p1131_p13) target bundleno = 1083 (0x43b), region = 48 }
  0x33   : > { %883 = dma.done.wait (%p1132_p1), [#allocation3], 512   ;;  %p1133_p0 = pmov %p1132_p1 }
  0x34   : > { %p285_p5 = scmp.lt.s32.totalorder %s974_s28, 2  ;;  %v909_v0 = vmov 0.0   ;;  %vm910_vm0 = vmmov 0   ;;  %vm302_vm1 = vcmask 1043456   ;;  %vm298_vm2 = vcmask 31744   ;;  %v382_v3 = vld [vmem:[%s1119_s3] sm:$0xff] }
  0x35   : > { %885 = vsyncadd (%p1133_p0), [#allocation3], 4294966784  ;;  %700 = vmatprep.subr.mxu0 %v909_v0  ;;  %702 = vmatprep.mubr.msk.f32.mxu0 %vm910_vm0, %v909_v0  ;;  %v290_v1 = vld [vmem:[%s1117_s1] sm:$0xf]  ;;  %v383_v4 = vld [vmem:[%s1119_s3 + $0x8] sm:$0xff]  ;;  %v911_v6 = vmov 0.0|0.0   ;;  %v557_v32 = vlaneseq }
  0x36   : > { %s286_s16 = scalar_select %p285_p5, %s974_s28, 2  ;;  %713 = vmatprep.mubr.msk.f32.mxu1 %vm910_vm0, %v909_v0  ;;  %701 = vmatpush3.msk.msra.mxu0 %vm302_vm1, %v290_v1  ;;  %v384_v5 = vld [vmem:[%s1119_s3 + $0x10] sm:$0xff]  ;;  %v728_v7 = vpack.c.bf16 %v383_v4, %v382_v3  ;;  %v385_v8 = vld [vmem:[%s1119_s3 + $0x18] sm:$0xff]  ;;  %v674_v10 = vld [vmem:[%s1118_s2] ss:$0 sm:$0xff]  ;;  %vm393_vm3 = vcmask 261120  }
  0x37   : > { %727 = vmatprep.subr.bf16.mxu1 %v911_v6  ;;  %733 = vmatprep.subr.bf16.mxu0 %v911_v6  ;;  %v731_v9 = vpack.c.bf16 %v385_v8, %v384_v5  ;;  %v473_v18 = vld [vmem:[#allocation2] sm:$0xff]  ;;  %v474_v19 = vld [vmem:[#allocation2 + $0x8] sm:$0xff]  ;;  %v475_v20 = vld [vmem:[#allocation2 + $0x10] sm:$0xff]  ;;  %v558_v33 = vand.u32 127, %v557_v32  ;;  %s282_s22 = sand.u32 1, %s896_s25   ;;  %s685_s29 = sshll.u32 %s974_s28, 7 }
  0x38   : > { %s673_s18 = sshll.u32 %s286_s16, 3  ;;  %729 = vmatpush3.bf16.msra.mxu1 %v728_v7  ;;  %v734_v21 = vpack.c.bf16 %v474_v19, %v473_v18  ;;  %v476_v22 = vld [vmem:[#allocation2 + $0x18] sm:$0xff]  ;;  %v678_v24 = vld [vmem:[%s1120_s4] ss:$0 sm:$0xff]  ;;  %s672_s23 = sshll.u32 %s282_s22, 3 }
  0x39   : > { %s288_s19 = scalar_lea.vmem %s1116_s0, %s673_s18  ;;  %730 = vmatprep.subr.bf16.mxu1 %v911_v6  ;;  %v737_v23 = vpack.c.bf16 %v476_v22, %v475_v20  ;;  %v681_v34 = vld [vmem:[%s1122_s6] ss:$0 sm:$0xff]  ;;  %vm559_vm4 = vcmp.lt.s32.totalorder %v558_v33, 10  ;;  %vm560_vm5 = vcmp.eq.s32.totalorder %v558_v33, 10  ;;  %s284_s8 = scalar_lea.vmem [#allocation5], %s672_s23 }
  0x3a   : > { %v289_v2 = vld [vmem:[%s288_s19] sm:$0xff]  ;;  %s595_s9 = sshll.u32 %s284_s8, 4  ;;  %s1074_s16 = scalar_lea.hbm %s1123_s7, %s685_s29  ;;  %s1076_s9 = int_to_ptr.vmem [resolvable:$true] %s595_s9 }
  0x3b   : > { %703 = vmatmul.mubr.msk.f32.vlgmr.msra.gmra.mrb[0].mxu0 %vm298_vm2, %v289_v2  ;;  %s582_s18 = scalar_lea.sflag [#allocation4], %s282_s22  ;;  %s838_s15 = scalar_lea.vmem %s1076_s9, 128 }
  0x3c   : > { %724 = vmatprep.mubr.msk.f32.mxu0 %vm910_vm0, %v909_v0  ;;  %732 = vmatpush3.bf16.msra.mxu1 %v731_v9  ;;  %p839_p6 = scmp.ne.s32.totalorder %s1076_s9, %s838_s15  ;;  %p1134_p9 = scmp.ne.s32.totalorder %s1127_s11, 0 }
  0x3d   : > { %735 = vmatpush3.bf16.msra.mxu0 %v734_v21  ;;  %s912_s28 = smov [#allocation5]  }
  0x3e   : > { %736 = vmatprep.subr.bf16.mxu0 %v911_v6  ;;  %p840_p10 = pnand %p839_p6, %p1134_p9  ;;  %s842_s13 = sshll.u32 %s912_s28, 4  ;;  %s843_s13 = int_to_ptr.vmem [resolvable:$false] %s842_s13 }
  0x3f   : > { %s844_s19 = scalar_lea.vmem %s843_s13, 256  ;;  %p845_p2 = scmp.lt.s32.totalorder %s1076_s9, %s843_s13 }
  0x40   : > { %p841_p12 = pneg %p840_p10  ;;  %p846_p3 = scmp.lt.s32.totalorder %s844_s19, %s838_s15 }
  0x41   : > { %738 = vmatpush3.bf16.msra.mxu0 %v737_v23 }
  0x42   : > { %p847_p4 = por %p846_p3, %p845_p2 }
  0x44   : > { %p848_p7 = pnand %p847_p4, %p841_p12 }
 0x10e   : > { %v372_v11 = vpop.f32.mrb[0].mxu0 }
 0x10f   : > { %v373_v12 = vadd.f32 %v674_v10, %v372_v11  ;;  %v704_v13 = vpop.f32.mrb[1].mxu0 }
 0x111   : > { %v677_v14 = vmul.f32 -1.442695, %v373_v12 }
 0x113   : > { %794 = vpow2.f32 %v677_v14 }
 0x11d   : > { %v795_v15 = vpop.eup %794 }
 0x11e   : > { %v379_v16 = vadd.f32 1.0, %v795_v15 }
 0x120   : > { %796 = vrcp.f32 %v379_v16 }
 0x12a   : > { %v797_v17 = vpop.eup %796 }
 0x12b   : > { %714 = vmatmul.mubr.msk.f32.vlgmr.msra.gmra.mrb[0].mxu1 %vm393_vm3, %v797_v17 }
 0x1fe   : > { %v463_v25 = vpop.f32.mrb[0].mxu1 }
 0x1ff   : > { %v464_v26 = vadd.f32 %v678_v24, %v463_v25  ;;  %v715_v27 = vpop.f32.mrb[1].mxu1 }
 0x201   : > { %v680_v28 = vmul.f32 -1.442695, %v464_v26 }
 0x203   : > { %798 = vpow2.f32 %v680_v28 }
 0x20d   : > { %v799_v29 = vpop.eup %798 }
 0x20e   : > { %v470_v30 = vadd.f32 1.0, %v799_v29 }
 0x210   : > { %800 = vrcp.f32 %v470_v30 }
 0x21a   : > { %v801_v31 = vpop.eup %800 }
 0x21b   : > { %725 = vmatmul.mubr.msk.f32.vlgmr.msra.gmra.mrb[2].mxu0 %vm393_vm3, %v801_v31 }
 0x2ee   : > { %v553_v35 = vpop.f32.mrb[2].mxu0 }
 0x2ef   : > { %v554_v36 = vadd.f32 %v681_v34, %v553_v35  ;;  %v726_v37 = vpop.f32.mrb[3].mxu0 }
 0x2f1   : > { %v683_v38 = vmul.f32 -1.442695, %v554_v36  ;;  %v561_v39 = vsel %vm559_vm4, %v554_v36, -inf }
 0x2f2   : > { %562 = vmax.xlane.f32.xlu0 %v561_v39 }
 0x2f3   : > { %802 = vpow2.f32 %v683_v38 }
 0x2fd   : > { %v803_v40 = vpop.eup %802 }
 0x2fe   : > { %v575_v41 = vadd.f32 1.0, %v803_v40 }
 0x300   : > { %804 = vrcp.f32 %v575_v41 }
 0x30a   : > { %v805_v42 = vpop.eup %804 }
 0x30b   : > { %v578_v43 = vsel %vm560_vm5, %v805_v42, 0.0 }
 0x37f   : > { %v563_v44 = vpop.xlane.xlu0 %562 }
 0x380   : > { %v564_v45 = vsub.f32 %v561_v39, %v563_v44 }
 0x382   : > { %v565_v46 = vmul.f32 1.442695, %v564_v45 }
 0x384   : > { %806 = vpow2.f32 %v565_v46 }
 0x38e   : > { %v807_v47 = vpop.eup %806 }
 0x38f   : > { %v567_v48 = vsel %vm559_vm4, %v807_v47, 0.0 }
 0x390   : > { %568 = vadd.xlane.f32.xlu0 %v567_v48 }
 0x41d   : > { %v569_v49 = vpop.xlane.xlu0 %568 }
 0x41e   : > { %808 = vrcp.f32 %v569_v49 }
 0x428   : > { %v809_v50 = vpop.eup %808 }
 0x429   : > { %v571_v51 = vmul.f32 %v809_v50, %v567_v48 }
 0x42b   : > { %v579_v52 = vadd.f32 %v578_v43, %v571_v51 }
 0x42d   : > { %580 = vst [vmem:[%s284_s8] sm:$0xff] %v579_v52 }
 0x42e   : > { %851 = shalt.err (!%p848_p7)
}
 0x42f   : > { %s852_s20 = scalar_lea.hbm %s1074_s16, 128  ;;  %s856_s23 = scalar_lea.hbm %s1123_s7, 384 }
 0x430   : > { %p853_p8 = scmp.ne.s32.totalorder %s1074_s16, %s852_s20  ;;  %p857_p1 = scmp.lt.u32.totalorder %s1074_s16, %s1123_s7 }
 0x431   : > { %p858_p0 = scmp.lt.u32.totalorder %s856_s23, %s852_s20  ;;  %p860_p6 = scmp.lt.u32.totalorder %s852_s20, %s1074_s16 }
 0x432   : > { %p854_p11 = pnand %p853_p8, %p1134_p9 }
 0x433   : > { %p859_p5 = por %p858_p0, %p857_p1 }
 0x434   : > { %p855_p13 = pneg %p854_p11 }
 0x435   : > { %p861_p10 = por %p860_p6, %p859_p5 }
 0x437   : > { %p862_p12 = pnand %p861_p10, %p855_p13 }
 0x439   : > { %865 = shalt.err (!%p862_p12)
}
 0x43a   : > { %743 = dma.vmem_to_hbm [thread:$0]  (%p1134_p9), %s1076_s9, 128, %s1074_s16, %s582_s18  }
 0x43b PF: > { %p755_p2 = scmp.ge.s32.totalorder %s904_s27, 2  ;;  %s607_s14 = sand.u32 1, %s892_s24  }
 0x43c   : > { %p1135_p3 = scmp.ne.s32.totalorder %s1128_s12, 0  ;;  %s608_s17 = scalar_lea.sflag [#allocation4], %s607_s14 }
 0x43e   : > { %p750_p4 = pnand %p755_p2, %p1135_p3 }
 0x440   : > { %887 = dma.done.wait (!%p750_p4), %s608_s17, 128  }
 0x441   : > { %889 = vsyncadd (!%p750_p4), %s608_s17, 4294967168  ;;  %p18_p7 = scmp.ge.s32.totalorder %s978_s30, 5   ;;  %s1136_s24 = smov %s896_s25 }
 0x442   : > { %s1137_s25 = smov %s900_s26  ;;  %s1138_s26 = smov %s989_s10 }
 0x443   : > { %s1139_s27 = smov %s978_s30  ;;  %20 = sbr.rel (!%p18_p7) target bundleno = 4 (0x4), region = 88 }
 0x44a   :  { %613 = vsyncpa [#allocation3], 1 }
 0x44b   :  { %615 = vsyncpa [#allocation3 + $0x1], 1 }
 0x44c   :  { %616 = vsyncpa [#allocation4], 1 }
 0x44d   :  { %618 = vsyncpa [#allocation4 + $0x1], 1 }

</bundles_post_ra>
